<compile_context>
chip_gen: v5e
topology: v5e:2x2
jax: 0.10.0
libtpu: 0.0.40
codegen_flags: <defaults>
</compile_context>

<pallas_src>
import jax
import jax.numpy as jnp
from jax.experimental import pallas as pl
from jax.experimental.pallas import tpu as pltpu


# ---------------------------------------------------------------------------
# Plain-JAX glue: combined 4x4 transform  M = (global @ inv(local')) @ diag(s,1)
# ---------------------------------------------------------------------------
def build_combined_transform(scale, global_pose, local_pose):
    """Combined 4x4 matrix M such that forward(x) == x @ M.T."""
    tmp_1 = local_pose.at[:3, 3].set(scale * local_pose[:3, 3])
    trans_pose = global_pose @ jnp.linalg.inv(tmp_1)
    s4 = jnp.concatenate([scale, jnp.ones((1,), dtype=scale.dtype)])
    # scaling x[:, :3] by `scale` == scaling trans_pose's columns by diag(s4).
    return trans_pose * s4[None, :]


# ---------------------------------------------------------------------------
# Pallas kernel: lane-dense per-point transform via block-diagonal matmul
# ---------------------------------------------------------------------------
_POINTS_PER_ROW = 32          # 128 lanes / 4 coords
_LANES = _POINTS_PER_ROW * 4  # 128


def _transform_kernel(x_ref, b_ref, o_ref):
    # x_ref : (tile, 128) VMEM tile -> 32*tile points
    # b_ref : (128, 128)  block-diagonal kron(I_32, M.T); constant block index,
    #                     fetched once and kept resident.
    # o_ref : (tile, 128) output tile
    o_ref[...] = jnp.dot(
        x_ref[...],
        b_ref[...],
        preferred_element_type=jnp.float32,
        precision=jax.lax.Precision.HIGHEST,   # exact-f32 path; HBM-bound so free
    ).astype(o_ref.dtype)


def _round_up(a, b):
    return ((a + b - 1) // b) * b


def apply_transform_pallas(x, M, *, tile_rows=8192):
    """y = x @ M.T for homogeneous points x: (N, 4), M: (4, 4)."""
    N, C = x.shape
    assert C == 4, "x must be (N, 4) homogeneous points"
    dtype = x.dtype

    # Pad only when N is not a multiple of 32 (points per 128-lane row).
    # Aligned N: the reshape below is a free view -> zero extra HBM passes.
    rem = N % _POINTS_PER_ROW
    if rem:
        n_in = N + (_POINTS_PER_ROW - rem)
        x_in = jnp.zeros((n_in, 4), dtype=dtype).at[:N].set(x)
    else:
        n_in = N
        x_in = x
    rows = n_in // _POINTS_PER_ROW
    x_view = x_in.reshape(rows, _LANES)        # contiguous -> no copy

    # Tile selection:
    #   rows <= 8   -> single block equal to the full array (allowed shape).
    #   rows  > 8   -> multiple of 8 sublanes, capped at tile_rows, and sized
    #                  so the grid has >= 2 steps (v7x: shard over both TCs).
    if rows <= 8:
        tile = rows
    else:
        tile = max(8, min(tile_rows, _round_up(pl.cdiv(rows, 2), 8)))
    grid = pl.cdiv(rows, tile)                 # partial last block is masked

    # 128x128 block-diagonal matrix: 32 copies of M.T (tiny, built once).
    B = jnp.kron(jnp.eye(_POINTS_PER_ROW, dtype=dtype), M.T.astype(dtype))

    y_view = pl.pallas_call(
        _transform_kernel,
        out_shape=jax.ShapeDtypeStruct((rows, _LANES), dtype),
        grid_spec=pltpu.PrefetchScalarGridSpec(
            num_scalar_prefetch=0,
            grid=(grid,),
            in_specs=[
                pl.BlockSpec((tile, _LANES), lambda i: (i, 0)),
                pl.BlockSpec((_LANES, _LANES), lambda i: (0, 0)),  # constant
            ],
            out_specs=pl.BlockSpec((tile, _LANES), lambda i: (i, 0)),
        ),
        compiler_params=pltpu.CompilerParams(
            dimension_semantics=("parallel",),       # shard over 2 TCs on v7x
            vmem_limit_bytes=48 * 1024 * 1024,        # v5e default is only 16 MiB
        ),
    )(x_view, B)

    y = y_view.reshape(n_in, 4)                # free view back to (n_in, 4)
    if rem:
        y = y[:N]                              # only the ragged case pays a slice
    return y


def model_forward(x, scale, global_pose, local_pose, *, tile_rows=8192):
    """Full forward pass of the PyTorch Model."""
    M = build_combined_transform(scale, global_pose, local_pose)
    return apply_transform_pallas(x, M, tile_rows=tile_rows)


# ---------------------------------------------------------------------------
# Demo / self-check
# ---------------------------------------------------------------------------
def _skew(v):
    z = jnp.zeros((), dtype=v.dtype)
    return jnp.stack([
        jnp.stack([z, -v[2], v[1]]),
        jnp.stack([v[2], z, -v[0]]),
        jnp.stack([-v[1], v[0], z]),
    ])


def _so3_exp(theta):
    W = _skew(theta)
    W2 = W @ W
    angle = jnp.linalg.norm(theta)
    I = jnp.eye(3, dtype=theta.dtype)
    small = I + W + 0.5 * W2
    a = jnp.where(angle < 1e-5, jnp.ones_like(angle), angle)
    large = I + (jnp.sin(a) / a) * W + ((1.0 - jnp.cos(a)) / (a ** 2)) * W2
    return jnp.where(angle < 1e-5, small, large)


def _make_pose(k_rot, k_t):
    R = _so3_exp(0.3 * jax.random.normal(k_rot, (3,), dtype=jnp.float32))
    t = jax.random.normal(k_t, (3,), dtype=jnp.float32)
    P = jnp.eye(4, dtype=jnp.float32)
    P = P.at[:3, :3].set(R)
    P = P.at[:3, 3].set(t)
    return P


if __name__ == "__main__":
    key = jax.random.PRNGKey(0)
    k_x, k_s, k_rg, k_tg, k_rl, k_tl = jax.random.split(key, 6)

    scale = 1.0 + 0.1 * jax.random.normal(k_s, (3,), dtype=jnp.float32)
    global_pose = _make_pose(k_rg, k_tg)
    local_pose = _make_pose(k_rl, k_tl)

    def reference(x):
        # Pure-JAX reference replicating the PyTorch forward line by line.
        tmp = x.at[:, :3].set(scale * x[:, :3])
        tmp_1 = local_pose.at[:3, 3].set(scale * local_pose[:3, 3])
        trans_pose = global_pose @ jnp.linalg.inv(tmp_1)
        return jnp.matmul(trans_pose, tmp.T,
                          precision=jax.lax.Precision.HIGHEST).T

    # Two small clouds exercising both code paths:
    #   N=200  -> ragged (N % 32 != 0), single block, rows < 8
    #   N=2336 -> aligned (zero-copy path), 2 grid steps, partial last block
    for n in (200, 2336):
        kx = jax.random.fold_in(k_x, n)
        xyz = jax.random.normal(kx, (n, 3), dtype=jnp.float32)
        x = jnp.concatenate([xyz, jnp.ones((n, 1), jnp.float32)], axis=1)

        y = model_forward(x, scale, global_pose, local_pose)
        y = jax.block_until_ready(y)
        y_ref = reference(x)

        assert y.shape == (n, 4)
        assert jnp.allclose(y, y_ref, atol=1e-4, rtol=1e-4), \
            f"mismatch vs reference for N={n}"

    print("KERNEL_OK")
</pallas_src>

<mosaic_0001>
module attributes {stable_mosaic.version = 11 : i64} {
  func.func @_transform_kernel(%arg0: i32, %arg1: memref<7x128xf32, #tpu.memory_space<vmem>>, %arg2: memref<128x128xf32, #tpu.memory_space<vmem>>, %arg3: memref<7x128xf32, #tpu.memory_space<vmem>>) attributes {dimension_semantics = [#tpu.dimension_semantics<parallel>], iteration_bounds = array<i64: 1>, scalar_prefetch = 0 : i64, scratch_operands = 0 : i64, tpu.core_type = #tpu.core_type<tc>, window_params = [{transform_indices = @transform_0, window_bounds = array<i64: 7, 128>}, {pipeline_mode = #tpu.pipeline_mode<synchronous>, transform_indices = @transform_1, window_bounds = array<i64: 128, 128>}, {transform_indices = @transform_2, window_bounds = array<i64: 7, 128>}]} {
    %c0 = arith.constant 0 : index
    %c0_0 = arith.constant 0 : index
    %0 = vector.load %arg1[%c0, %c0_0] : memref<7x128xf32, #tpu.memory_space<vmem>>, vector<7x128xf32>
    %c0_1 = arith.constant 0 : index
    %c0_2 = arith.constant 0 : index
    %1 = vector.load %arg2[%c0_1, %c0_2] : memref<128x128xf32, #tpu.memory_space<vmem>>, vector<128x128xf32>
    %cst = arith.constant dense<0.000000e+00> : vector<7x128xf32>
    %2 = tpu.matmul %0, %1, %cst {dimension_numbers = #tpu.dot_dimension_numbers<[1], [0], [0], [1], [0, 0, 1, 1], [], []>, precision = #tpu.contract_precision<fp32>} : vector<7x128xf32>, vector<128x128xf32>, vector<7x128xf32> -> vector<7x128xf32>
    %c0_3 = arith.constant 0 : index
    %c0_4 = arith.constant 0 : index
    %3 = vector.load %arg3[%c0_3, %c0_4] : memref<7x128xf32, #tpu.memory_space<vmem>>, vector<7x128xf32>
    tpu.vector_store %arg3[%c0_3, %c0_4], %2 {strides = array<i32>} : memref<7x128xf32, #tpu.memory_space<vmem>>, vector<7x128xf32>,
    return
  }
  func.func @transform_0(%arg0: i32) -> (i32, i32) {
    %c0_i32 = arith.constant 0 : i32
    %c0_i32_0 = arith.constant 0 : i32
    return %arg0, %c0_i32 : i32, i32
  }
  func.func @transform_1(%arg0: i32) -> (i32, i32) {
    %c0_i32 = arith.constant 0 : i32
    %c0_i32_0 = arith.constant 0 : i32
    %c0_i32_1 = arith.constant 0 : i32
    return %c0_i32, %c0_i32_0 : i32, i32
  }
  func.func @transform_2(%arg0: i32) -> (i32, i32) {
    %c0_i32 = arith.constant 0 : i32
    %c0_i32_0 = arith.constant 0 : i32
    return %arg0, %c0_i32 : i32, i32
  }
}

</mosaic_0001>

<bundles_post_ra>
// kernel: tpu_custom_call.1
= control target key start
LH: loop header
LB: loop body
LE: loop exit
PB: predicated region body
PF: predicated region fallthrough
CT: control target
= control target key end

     0   :  { %7 = vsyncpa [#allocation3], 0  ;;  %s769_s0 = inlined_call_operand.hbm [shape: f32[7,128], index: 0, kind: input, shape index: {}]   ;;  %s770_s1 = inlined_call_operand.hbm [shape: f32[128,128], index: 1, kind: input, shape index: {}]   ;;  %s771_s2 = inlined_call_operand.hbm [shape: f32[7,128], index: 2, kind: output, shape index: {}]  }
   0x1   :  { %8 = vsyncpa [#allocation6], 0 }
   0x2   :  { %9 = vsyncpa [#allocation4], 0  ;;  %s15_s11 = sshll.u32 %s769_s0, 4  ;;  %s502_s12 = smov [#allocation2]   ;;  %s16_s11 = int_to_ptr.hbm [resolvable:$true] %s15_s11 }
   0x3   :  { %s17_s13 = sshll.u32 %s502_s12, 4  ;;  %s25_s16 = sshll.u32 %s770_s1, 4  ;;  %s18_s13 = int_to_ptr.vmem [resolvable:$true] %s17_s13  ;;  %s26_s16 = int_to_ptr.hbm [resolvable:$true] %s25_s16 }
   0x4   :  { %20 = dma.hbm_to_vmem [thread:$0]  %s16_s11, 128, %s18_s13, [#allocation3]  }
   0x5   :  { %s503_s17 = smov [#allocation5]   ;;  %s504_s19 = smov 128  }
   0x6   :  { %s27_s18 = sshll.u32 %s503_s17, 4  ;;  %s505_s20 = smov 8   ;;  %s28_s18 = int_to_ptr.vmem [resolvable:$true] %s27_s18 }
   0x7   :  { %33 = dma.hbm_to_vmem [thread:$0]  %s26_s16, 2048, %s28_s18, [#allocation6], %s504_s19, %s504_s19, %s505_s20  }
   0x8   :  { %496 = dma.done.wait [#allocation3], 128  }
   0x9   :  { %497 = vsyncadd [#allocation3], 4294967168 }
   0xa   :  { %498 = dma.done.wait [#allocation6], 2048  }
   0xb   :  { %499 = vsyncadd [#allocation6], 4294965248  ;;  %v58_v0 = vld [vmem:[#allocation5 + $0x78] sm:$0xff]  ;;  %v57_v1 = vld [vmem:[#allocation5 + $0x70] sm:$0xff]  ;;  %s506_s0 = smov [#allocation7]   ;;  %s408_s23 = sshll.u32 %s771_s2, 4  ;;  %s409_s23 = int_to_ptr.hbm [resolvable:$true] %s408_s23 }
   0xc   :  { %v56_v2 = vld [vmem:[#allocation5 + $0x68] sm:$0xff]  ;;  %v528_v3 = vand.u32 4294901760, %v58_v0  ;;  %v530_v4 = vand.u32 4294901760, %v57_v1  ;;  %v55_v6 = vld [vmem:[#allocation5 + $0x60] sm:$0xff]  ;;  %v54_v7 = vld [vmem:[#allocation5 + $0x58] sm:$0xff]  ;;  %s406_s1 = sshll.u32 %s506_s0, 4  ;;  %s407_s1 = int_to_ptr.vmem [resolvable:$true] %s406_s1 }
   0xd   :  { %v532_v5 = vand.u32 4294901760, %v56_v2  ;;  %v53_v8 = vld [vmem:[#allocation5 + $0x50] sm:$0xff]  ;;  %v534_v9 = vand.u32 4294901760, %v55_v6  ;;  %v536_v10 = vand.u32 4294901760, %v54_v7  ;;  %v52_v12 = vld [vmem:[#allocation5 + $0x48] sm:$0xff]  ;;  %v51_v13 = vld [vmem:[#allocation5 + $0x40] sm:$0xff] }
   0xe   :  { %v538_v11 = vand.u32 4294901760, %v53_v8  ;;  %60 = vmatpush.msra.mxu0 %v528_v3  ;;  %v542_v14 = vsub.f32 %v58_v0, %v528_v3  ;;  %v545_v15 = vsub.f32 %v57_v1, %v530_v4  ;;  %v550_v17 = vand.u32 4294901760, %v52_v12  ;;  %v50_v18 = vld [vmem:[#allocation5 + $0x38] sm:$0xff]  ;;  %256 = vmatpush.msra.mxu3 %v528_v3  ;;  %v49_v26 = vld [vmem:[#allocation5 + $0x30] sm:$0xff]  ;;  %v48_v36 = vld [vmem:[#allocation5 + $0x28] sm:$0xff] }
   0xf   :  { %v548_v16 = vsub.f32 %v56_v2, %v532_v5  ;;  %v554_v19 = vsub.f32 %v55_v6, %v534_v9  ;;  %v557_v20 = vsub.f32 %v54_v7, %v536_v10  ;;  %v566_v25 = vand.u32 4294901760, %v51_v13  ;;  %v47_v42 = vld [vmem:[#allocation5 + $0x20] sm:$0xff]  ;;  %v46_v47 = vld [vmem:[#allocation5 + $0x18] sm:$0xff]  ;;  %v45_v55 = vld [vmem:[#allocation5 + $0x10] sm:$0xff] }
  0x10   :  { %v560_v21 = vsub.f32 %v53_v8, %v538_v11  ;;  %62 = vmatpush.msra.mxu0 %v530_v4  ;;  %v102_v22 = vand.u32 4294901760, %v542_v14  ;;  %v108_v23 = vand.u32 4294901760, %v545_v15  ;;  %203 = vmatpush.msra.mxu2 %v542_v14  ;;  %v570_v28 = vand.u32 4294901760, %v50_v18  ;;  %v44_v60 = vld [vmem:[#allocation5 + $0x8] sm:$0xff]  ;;  %v43_v1 = vld [vmem:[#allocation5] sm:$0xff] }
  0x11   :  { %v114_v24 = vand.u32 4294901760, %v548_v16  ;;  %v120_v27 = vand.u32 4294901760, %v554_v19  ;;  %v573_v29 = vsub.f32 %v52_v12, %v550_v17  ;;  %258 = vmatpush.msra.mxu3 %v530_v4  ;;  %v126_v33 = vand.u32 4294901760, %v557_v20  ;;  %v42_v7 = vld [vmem:[#allocation2] sm:$0x7f] }
  0x12   :  { %64 = vmatpush.msra.mxu0 %v532_v5  ;;  %v103_v30 = vsub.f32 %v542_v14, %v102_v22  ;;  %v109_v31 = vsub.f32 %v545_v15, %v108_v23  ;;  %206 = vmatpush.msra.mxu2 %v545_v15  ;;  %v132_v34 = vand.u32 4294901760, %v560_v21  ;;  %v589_v35 = vand.u32 4294901760, %v49_v26 }
  0x13   :  { %v115_v32 = vsub.f32 %v548_v16, %v114_v24  ;;  %260 = vmatpush.msra.mxu3 %v532_v5  ;;  %v121_v39 = vsub.f32 %v554_v19, %v120_v27  ;;  %v597_v40 = vsub.f32 %v51_v13, %v566_v25  ;;  %v138_v41 = vand.u32 4294901760, %v573_v29 }
  0x14   :  { %v104_v37 = vand.u32 4294901760, %v103_v30  ;;  %66 = vmatpush.msra.mxu0 %v534_v9  ;;  %v110_v38 = vand.u32 4294901760, %v109_v31  ;;  %209 = vmatpush.msra.mxu2 %v548_v16  ;;  %v127_v44 = vsub.f32 %v557_v20, %v126_v33  ;;  %v606_v45 = vand.u32 4294901760, %v48_v36 }
  0x15   :  { %262 = vmatpush.msra.mxu3 %v534_v9  ;;  %v116_v43 = vand.u32 4294901760, %v115_v32  ;;  %v609_v46 = vsub.f32 %v50_v18, %v570_v28  ;;  %v133_v48 = vsub.f32 %v560_v21, %v132_v34  ;;  %v122_v49 = vand.u32 4294901760, %v121_v39 }
  0x16   :  { %105 = vmatpush.msra.mxu1 %v104_v37  ;;  %68 = vmatpush.msra.mxu0 %v536_v10  ;;  %v144_v50 = vand.u32 4294901760, %v597_v40  ;;  %v618_v51 = vand.u32 4294901760, %v47_v42  ;;  %v621_v52 = vsub.f32 %v49_v26, %v589_v35  ;;  %v139_v53 = vsub.f32 %v573_v29, %v138_v41 }
  0x17   :  { %212 = vmatpush.msra.mxu2 %v554_v19  ;;  %264 = vmatpush.msra.mxu3 %v536_v10  ;;  %v626_v54 = vand.u32 4294901760, %v46_v47  ;;  %v128_v56 = vand.u32 4294901760, %v127_v44  ;;  %v150_v57 = vand.u32 4294901760, %v609_v46  ;;  %v633_v58 = vsub.f32 %v48_v36, %v606_v45 }
  0x18   :  { %111 = vmatpush.msra.mxu1 %v110_v38  ;;  %70 = vmatpush.msra.mxu0 %v538_v11  ;;  %v134_v59 = vand.u32 4294901760, %v133_v48  ;;  %v145_v61 = vsub.f32 %v597_v40, %v144_v50  ;;  %v156_v62 = vand.u32 4294901760, %v621_v52  ;;  %v642_v63 = vand.u32 4294901760, %v45_v55 }
  0x19   :  { %215 = vmatpush.msra.mxu2 %v557_v20  ;;  %266 = vmatpush.msra.mxu3 %v538_v11  ;;  %v645_v0 = vsub.f32 %v47_v42, %v618_v51  ;;  %v140_v2 = vand.u32 4294901760, %v139_v53  ;;  %v648_v6 = vsub.f32 %v46_v47, %v626_v54  ;;  %v151_v8 = vsub.f32 %v609_v46, %v150_v57 }
  0x1a   :  { %117 = vmatpush.msra.mxu1 %v116_v43  ;;  %72 = vmatpush.msra.mxu0 %v550_v17  ;;  %v162_v12 = vand.u32 4294901760, %v633_v58  ;;  %v657_v13 = vand.u32 4294901760, %v44_v60  ;;  %v659_v18 = vand.u32 4294901760, %v42_v7  ;;  %v661_v26 = vand.u32 4294901760, %v43_v1 }
  0x1b   :  { %218 = vmatpush.msra.mxu2 %v560_v21  ;;  %268 = vmatpush.msra.mxu3 %v550_v17  ;;  %v146_v30 = vand.u32 4294901760, %v145_v61  ;;  %v157_v31 = vsub.f32 %v621_v52, %v156_v62  ;;  %v168_v32 = vand.u32 4294901760, %v645_v0  ;;  %v671_v36 = vsub.f32 %v45_v55, %v642_v63 }
  0x1c   :  { %123 = vmatpush.msra.mxu1 %v122_v49  ;;  %74 = vmatpush.msra.mxu0 %v566_v25  ;;  %v174_v37 = vand.u32 4294901760, %v648_v6  ;;  %v152_v38 = vand.u32 4294901760, %v151_v8  ;;  %v163_v39 = vsub.f32 %v633_v58, %v162_v12  ;;  %v681_v42 = vsub.f32 %v44_v60, %v657_v13 }
  0x1d   :  { %221 = vmatpush.msra.mxu2 %v573_v29  ;;  %270 = vmatpush.msra.mxu3 %v566_v25  ;;  %v92_v43 = vsub.f32 %v42_v7, %v659_v18  ;;  %v158_v44 = vand.u32 4294901760, %v157_v31  ;;  %v169_v47 = vsub.f32 %v645_v0, %v168_v32  ;;  %v180_v48 = vand.u32 4294901760, %v671_v36 }
  0x1e   :  { %129 = vmatpush.msra.mxu1 %v128_v56  ;;  %76 = vmatpush.msra.mxu0 %v570_v28  ;;  %v692_v49 = vsub.f32 %v43_v1, %v661_v26  ;;  %v164_v53 = vand.u32 4294901760, %v163_v39  ;;  %v175_v55 = vsub.f32 %v648_v6, %v174_v37  ;;  %v186_v56 = vand.u32 4294901760, %v681_v42 }
  0x1f   :  { %224 = vmatpush.msra.mxu2 %v597_v40  ;;  %272 = vmatpush.msra.mxu3 %v570_v28  ;;  %v170_v60 = vand.u32 4294901760, %v169_v47  ;;  %v181_v61 = vsub.f32 %v671_v36, %v180_v48 }
  0x20   :  { %135 = vmatpush.msra.mxu1 %v134_v59  ;;  %78 = vmatpush.msra.mxu0 %v589_v35  ;;  %v93_v59 = vand.u32 4294901760, %v92_v43  ;;  %v192_v1 = vand.u32 4294901760, %v692_v49  ;;  %v187_v7 = vsub.f32 %v681_v42, %v186_v56 }
  0x21   :  { %227 = vmatpush.msra.mxu2 %v609_v46  ;;  %274 = vmatpush.msra.mxu3 %v589_v35 }
  0x22   :  { %141 = vmatpush.msra.mxu1 %v140_v2  ;;  %80 = vmatpush.msra.mxu0 %v606_v45  ;;  %v176_v2 = vand.u32 4294901760, %v175_v55  ;;  %v94_v8 = vsub.f32 %v92_v43, %v93_v59  ;;  %v193_v31 = vsub.f32 %v692_v49, %v192_v1 }
  0x23   :  { %230 = vmatpush.msra.mxu2 %v621_v52  ;;  %276 = vmatpush.msra.mxu3 %v606_v45 }
  0x24   :  { %147 = vmatpush.msra.mxu1 %v146_v30  ;;  %82 = vmatpush.msra.mxu0 %v618_v51  ;;  %v182_v30 = vand.u32 4294901760, %v181_v61  ;;  %v95_v39 = vand.u32 4294901760, %v94_v8 }
  0x25   :  { %233 = vmatpush.msra.mxu2 %v633_v58  ;;  %278 = vmatpush.msra.mxu3 %v618_v51 }
  0x26   :  { %153 = vmatpush.msra.mxu1 %v152_v38  ;;  %84 = vmatpush.msra.mxu0 %v626_v54  ;;  %v188_v38 = vand.u32 4294901760, %v187_v7 }
  0x27   :  { %236 = vmatpush.msra.mxu2 %v645_v0  ;;  %280 = vmatpush.msra.mxu3 %v626_v54 }
  0x28   :  { %159 = vmatpush.msra.mxu1 %v158_v44  ;;  %86 = vmatpush.msra.mxu0 %v642_v63  ;;  %v194_v44 = vand.u32 4294901760, %v193_v31 }
  0x29   :  { %239 = vmatpush.msra.mxu2 %v648_v6  ;;  %282 = vmatpush.msra.mxu3 %v642_v63 }
  0x2a   :  { %165 = vmatpush.msra.mxu1 %v164_v53  ;;  %88 = vmatpush.msra.mxu0 %v657_v13 }
  0x2b   :  { %242 = vmatpush.msra.mxu2 %v671_v36  ;;  %284 = vmatpush.msra.mxu3 %v657_v13 }
  0x2c   :  { %171 = vmatpush.msra.mxu1 %v170_v60  ;;  %90 = vmatpush.msra.mxu0 %v661_v26 }
  0x2d   :  { %245 = vmatpush.msra.mxu2 %v681_v42  ;;  %286 = vmatpush.msra.mxu3 %v661_v26 }
  0x2e   :  { %297 = vmatpush.msrb.mxu0 %v102_v22  ;;  %177 = vmatpush.msra.mxu1 %v176_v2 }
  0x2f   :  { %248 = vmatpush.msra.mxu2 %v692_v49  ;;  %290 = vmatmul.f32.vlgmr.msra.gmra.mxu3 %v93_v59 }
  0x30   :  { %301 = vmatpush.msrb.mxu0 %v108_v23  ;;  %183 = vmatpush.msra.mxu1 %v182_v30 }
  0x31   :  { %251 = vmatmul.f32.vlgmr.msra.gmra.mxu2 %v92_v43  ;;  %96 = vmatmul.f32.vlgmr.msra.gmra.mxu0 %v95_v39 }
  0x32   :  { %305 = vmatpush.msrb.mxu0 %v114_v24  ;;  %189 = vmatpush.msra.mxu1 %v188_v38 }
  0x34   :  { %309 = vmatpush.msrb.mxu0 %v120_v27  ;;  %195 = vmatpush.msra.mxu1 %v194_v44 }
  0x35   :  { %197 = vmatmul.f32.vlgmr.msra.gmra.mxu1 %v659_v18 }
  0x36   :  { %364 = vmatpush.msrb.mxu1 %v528_v3  ;;  %313 = vmatpush.msrb.mxu0 %v126_v33 }
  0x38   :  { %366 = vmatpush.msrb.mxu1 %v530_v4  ;;  %317 = vmatpush.msrb.mxu0 %v132_v34 }
  0x3a   :  { %368 = vmatpush.msrb.mxu1 %v532_v5  ;;  %321 = vmatpush.msrb.mxu0 %v138_v41 }
  0x3c   :  { %370 = vmatpush.msrb.mxu1 %v534_v9  ;;  %325 = vmatpush.msrb.mxu0 %v144_v50 }
  0x3e   :  { %372 = vmatpush.msrb.mxu1 %v536_v10  ;;  %329 = vmatpush.msrb.mxu0 %v150_v57 }
  0x40   :  { %374 = vmatpush.msrb.mxu1 %v538_v11  ;;  %333 = vmatpush.msrb.mxu0 %v156_v62 }
  0x42   :  { %376 = vmatpush.msrb.mxu1 %v550_v17  ;;  %337 = vmatpush.msrb.mxu0 %v162_v12 }
  0x44   :  { %378 = vmatpush.msrb.mxu1 %v566_v25  ;;  %341 = vmatpush.msrb.mxu0 %v168_v32 }
  0x46   :  { %380 = vmatpush.msrb.mxu1 %v570_v28  ;;  %345 = vmatpush.msrb.mxu0 %v174_v37 }
  0x48   :  { %382 = vmatpush.msrb.mxu1 %v589_v35  ;;  %349 = vmatpush.msrb.mxu0 %v180_v48 }
  0x4a   :  { %384 = vmatpush.msrb.mxu1 %v606_v45  ;;  %353 = vmatpush.msrb.mxu0 %v186_v56 }
  0x4c   :  { %386 = vmatpush.msrb.mxu1 %v618_v51  ;;  %357 = vmatpush.msrb.mxu0 %v192_v1 }
  0x4d   :  { %359 = vmatmul.f32.vlgmr.msrb.gmra.mxu0 %v659_v18 }
  0x4e   :  { %388 = vmatpush.msrb.mxu1 %v626_v54 }
  0x50   :  { %390 = vmatpush.msrb.mxu1 %v642_v63 }
  0x52   :  { %392 = vmatpush.msrb.mxu1 %v657_v13 }
  0x54   :  { %394 = vmatpush.msrb.mxu1 %v661_v26 }
  0x55   :  { %396 = vmatmul.f32.vlgmr.msrb.gmra.mxu1 %v659_v18 }
  0xae   :  { %v97_v4 = vpop.f32.mrf.mxu0 }
  0xb2   :  { %v198_v3 = vpop.f32.mrf.mxu1  ;;  %v291_v11 = vpop.f32.mrf.mxu3 }
  0xb3   :  { %v199_v5 = vadd.f32 %v198_v3, %v97_v4 }
  0xb4   :  { %v252_v9 = vpop.f32.mrf.mxu2 }
  0xb5   :  { %v253_v10 = vadd.f32 %v252_v9, %v199_v5 }
  0xb7   :  { %v292_v14 = vadd.f32 %v291_v11, %v253_v10 }
  0xca   :  { %v360_v15 = vpop.f32.mrf.mxu0 }
  0xcb   :  { %v361_v16 = vadd.f32 %v360_v15, %v292_v14 }
  0xd2   :  { %v397_v17 = vpop.f32.mrf.mxu1 }
  0xd3   :  { %v398_v19 = vadd.f32 %v397_v17, %v361_v16 }
  0xd5   :  { %400 = vst [vmem:[#allocation7] sm:$0x7f] %v398_v19 }
  0xd6   :  { %411 = dma.vmem_to_hbm [thread:$0]  %s407_s1, 128, %s409_s23, [#allocation4]  }
  0xd7   :  { %500 = dma.done.wait [#allocation4], 128  }
  0xd8   :  { %501 = vsyncadd [#allocation4], 4294967168 }
  0xd9   :  { %416 = vsyncpa [#allocation3], 1 }
  0xda   :  { %417 = vsyncpa [#allocation6], 1 }
  0xdb   :  { %418 = vsyncpa [#allocation4], 1 }

</bundles_post_ra>
